<compile_context>
chip_gen: v7x
topology: tpu7x:2x2x1
jax: 0.10.0
libtpu: 0.0.40
codegen_flags: <defaults>
</compile_context>

<pallas_src>
import functools

import jax
import jax.numpy as jnp
from jax import lax
from jax.experimental import pallas as pl
from jax.experimental.pallas import tpu as pltpu


NEG_BIG = -1e16  # matches torch masked_fill_(-float(1e+16))


def _round_up(x, m):
    return ((x + m - 1) // m) * m


def _gat_sin_kernel(x_ref, graph_ref, p_ref, o_ref, *,
                    din, hidden, dout, r_w2, r_b1, r_b2):
    """Fused 2-layer GAT forward over the full (block-diagonal) batch.

    x_ref:     [B*N, Din]     flow, batch-flattened
    graph_ref: [B*N, B*N]     block-diagonal adjacency kron(I_B, graph)
    p_ref:     [64, max(H,Dout)] packed params:
                 rows [0, din)        -> W1            (Din x H)
                 rows [r_w2, r_w2+H)  -> W2 (cols :Dout)
                 row  r_b1            -> b1 (cols :H)
                 row  r_b2            -> b2 (cols :Dout)
    o_ref:     [B*N, Dout]
    """
    graph = graph_ref[...]
    # Adjacency + cross-batch mask in one.  (PyTorch masks on `score*graph == 0`;
    # with float scores the two differ only on the measure-zero event that a
    # genuine edge's score is exactly 0.0.)
    mask = graph == 0.0

    w1 = p_ref[0:din, 0:hidden]                    # [Din, H]
    w2 = p_ref[r_w2:r_w2 + hidden, 0:dout]         # [H, Dout]
    b1 = p_ref[r_b1:r_b1 + 1, 0:hidden]            # [1, H]
    b2 = p_ref[r_b2:r_b2 + 1, 0:dout]              # [1, Dout]

    def attend(h):
        """Block-diagonal graph-attention aggregation.  h: [B*N, D]."""
        # h @ h.T without an explicit transpose: contract the feature axis of
        # both operands (the MXU consumes the transposed RHS natively).
        s = lax.dot_general(
            h, h,
            dimension_numbers=(((1,), (1,)), ((), ())),
            preferred_element_type=jnp.float32,
        )                                                      # [B*N, B*N]
        s = jnp.where(mask, NEG_BIG, s)
        # softmax over the key axis (dim=2 in PyTorch); cross-batch entries
        # underflow to exactly 0.0 in exp(), so the block-diagonal fusion is
        # numerically identical to per-batch attention.
        s = s - jnp.max(s, axis=-1, keepdims=True)
        e = jnp.exp(s)
        inv = pl.reciprocal(jnp.sum(e, axis=-1, keepdims=True), approx=True)
        attn = e * inv
        return jnp.dot(attn, h, preferred_element_type=jnp.float32)   # [B*N, D]

    # ---------------- GraphAttentionLayer 1 (+ ReLU) ----------------
    h1 = jnp.dot(x_ref[...], w1, preferred_element_type=jnp.float32)  # [B*N, H]
    r1 = jnp.maximum(attend(h1) + b1, 0.0)                            # [B*N, H]

    # ---------------- GraphAttentionLayer 2 ----------------
    h2 = jnp.dot(r1, w2, preferred_element_type=jnp.float32)          # [B*N, Dout]
    o_ref[...] = (attend(h2) + b2).astype(o_ref.dtype)                # single store


def gat_sin_forward(flow, graph, w1, b1, w2, b2):
    """flow: [B, N, Din], graph: [N, N].  Returns [B, N, 1, Dout]."""
    B, N, Din = flow.shape
    H = w1.shape[1]
    Dout = w2.shape[1]
    BN = B * N

    # Free row-major reshape + block-diagonal graph, built OUTSIDE the kernel.
    x2d = flow.reshape(BN, Din)
    graph_bd = jnp.kron(jnp.eye(B, dtype=graph.dtype), graph)          # [BN, BN]

    # Pack W1 / W2 / b1 / b2 into one parameter slab (1 DMA instead of 4).
    width = max(H, Dout)
    r_w2 = _round_up(Din, 8)
    r_b1 = _round_up(r_w2 + H, 8)
    r_b2 = r_b1 + 8
    rows = _round_up(r_b2 + 1, 8)
    params = jnp.zeros((rows, width), jnp.float32)
    params = params.at[0:Din, 0:H].set(w1)
    params = params.at[r_w2:r_w2 + H, 0:Dout].set(w2)
    params = params.at[r_b1, 0:H].set(b1)
    params = params.at[r_b2, 0:Dout].set(b2)

    kernel = functools.partial(
        _gat_sin_kernel,
        din=Din, hidden=H, dout=Dout, r_w2=r_w2, r_b1=r_b1, r_b2=r_b2,
    )

    # Advisory cost so XLA schedules around the custom call.
    flops = (2 * BN * Din * H            # proj 1
             + 4 * BN * BN * H           # score 1 + aggregate 1
             + 2 * BN * H * Dout         # proj 2
             + 4 * BN * BN * Dout)       # score 2 + aggregate 2
    transcendentals = 2 * BN * BN + 2 * BN         # exp + reciprocal
    bytes_accessed = 4 * (BN * Din + BN * BN + rows * width + BN * Dout)
    cost = pl.CostEstimate(flops=flops, transcendentals=transcendentals,
                           bytes_accessed=bytes_accessed)

    vmem = pl.BlockSpec(memory_space=pltpu.MemorySpace.VMEM)
    out2d = pl.pallas_call(
        kernel,
        out_shape=jax.ShapeDtypeStruct((BN, Dout), jnp.float32),
        in_specs=[vmem, vmem, vmem],
        out_specs=vmem,
        compiler_params=pltpu.CompilerParams(vmem_limit_bytes=32 * 1024 * 1024),
        cost_estimate=cost,
    )(x2d, graph_bd, params)

    # trailing unsqueeze(2) from the PyTorch forward
    return out2d.reshape(B, N, 1, Dout)


def _reference(flow, graph, w1, b1, w2, b2):
    """Pure-JAX reference, faithful to the PyTorch module."""
    def layer(x, w, b):
        h = x @ w                                            # [B, N, out]
        s = jnp.einsum("bnd,bmd->bnm", h, h) * graph[None]   # bmm(h, h^T) * graph
        s = jnp.where(s == 0.0, NEG_BIG, s)                  # masked_fill_(eq(outputs, 0))
        a = jax.nn.softmax(s, axis=2)
        return jnp.einsum("bnm,bmd->bnd", a, h) + b

    r = jax.nn.relu(layer(flow, w1, b1))
    r = layer(r, w2, b2)
    return r[:, :, None, :]


if __name__ == "__main__":
    # Shapes consistent with the module: B=2 batches, N=8 nodes,
    # input_dim=16, hidden_dim=32, output_dim=8.
    B, N, INPUT_DIM, HIDDEN_DIM, OUTPUT_DIM = 2, 8, 16, 32, 8

    key = jax.random.PRNGKey(0)
    k_flow, k_graph, k_w1, k_b1, k_w2, k_b2 = jax.random.split(key, 6)

    # flow_x: [B, N, C]  (already the flattened view(B, N, -1))
    flow = jax.random.normal(k_flow, (B, N, INPUT_DIM), dtype=jnp.float32)

    # symmetric 0/1 adjacency with self-loops
    g = (jax.random.uniform(k_graph, (N, N)) > 0.5).astype(jnp.float32)
    graph = jnp.clip(g + g.T + jnp.eye(N, dtype=jnp.float32), 0.0, 1.0)

    # nn.init.normal_ weights/biases, stored pre-transposed as [in, out]
    w1 = jax.random.normal(k_w1, (INPUT_DIM, HIDDEN_DIM), dtype=jnp.float32)
    b1 = jax.random.normal(k_b1, (HIDDEN_DIM,), dtype=jnp.float32)
    w2 = jax.random.normal(k_w2, (HIDDEN_DIM, OUTPUT_DIM), dtype=jnp.float32)
    b2 = jax.random.normal(k_b2, (OUTPUT_DIM,), dtype=jnp.float32)

    out = gat_sin_forward(flow, graph, w1, b1, w2, b2)
    out = jax.block_until_ready(out)

    ref = _reference(flow, graph, w1, b1, w2, b2)
    assert out.shape == (B, N, 1, OUTPUT_DIM), out.shape
    # slightly looser tolerance: softmax denominators use the EUP approximate reciprocal
    assert jnp.allclose(out, ref, rtol=2e-3, atol=2e-2), "mismatch vs reference"

    print("KERNEL_OK")
</pallas_src>

<mosaic_0001>
module attributes {stable_mosaic.version = 11 : i64} {
  func.func @_gat_sin_kernel(%arg0: memref<16x16xf32, #tpu.memory_space<vmem>>, %arg1: memref<16x16xf32, #tpu.memory_space<vmem>>, %arg2: memref<64x32xf32, #tpu.memory_space<vmem>>, %arg3: memref<16x8xf32, #tpu.memory_space<vmem>>) attributes {dimension_semantics = [], scalar_prefetch = 0 : i64, scratch_operands = 0 : i64, tpu.core_type = #tpu.core_type<tc>} {
    %c0 = arith.constant 0 : index
    %c0_0 = arith.constant 0 : index
    %0 = vector.load %arg1[%c0, %c0_0] : memref<16x16xf32, #tpu.memory_space<vmem>>, vector<16x16xf32>
    %cst = arith.constant 0.000000e+00 : f32
    %1 = vector.broadcast %cst : f32 to vector<16x16xf32>
    %2 = arith.cmpf oeq, %0, %1 : vector<16x16xf32>
    %c0_1 = arith.constant 0 : index
    %c0_2 = arith.constant 0 : index
    %3 = vector.load %arg2[%c0_1, %c0_2] : memref<64x32xf32, #tpu.memory_space<vmem>>, vector<16x32xf32>
    %c16 = arith.constant 16 : index
    %c0_3 = arith.constant 0 : index
    %4 = vector.load %arg2[%c16, %c0_3] : memref<64x32xf32, #tpu.memory_space<vmem>>, vector<32x8xf32>
    %c48 = arith.constant 48 : index
    %c0_4 = arith.constant 0 : index
    %5 = vector.load %arg2[%c48, %c0_4] : memref<64x32xf32, #tpu.memory_space<vmem>>, vector<1x32xf32>
    %c56 = arith.constant 56 : index
    %c0_5 = arith.constant 0 : index
    %6 = vector.load %arg2[%c56, %c0_5] : memref<64x32xf32, #tpu.memory_space<vmem>>, vector<1x8xf32>
    %c0_6 = arith.constant 0 : index
    %c0_7 = arith.constant 0 : index
    %7 = vector.load %arg0[%c0_6, %c0_7] : memref<16x16xf32, #tpu.memory_space<vmem>>, vector<16x16xf32>
    %cst_8 = arith.constant dense<0.000000e+00> : vector<16x32xf32>
    %8 = tpu.matmul %7, %3, %cst_8 {dimension_numbers = #tpu.dot_dimension_numbers<[1], [0], [0], [1], [0, 0, 1, 1], [], []>} : vector<16x16xf32>, vector<16x32xf32>, vector<16x32xf32> -> vector<16x32xf32>
    %cst_9 = arith.constant dense<0.000000e+00> : vector<16x16xf32>
    %9 = tpu.matmul %8, %8, %cst_9 {dimension_numbers = #tpu.dot_dimension_numbers<[1], [1], [0], [0], [0, 0, 1, 0], [], []>} : vector<16x32xf32>, vector<16x32xf32>, vector<16x16xf32> -> vector<16x16xf32>
    %cst_10 = arith.constant -1.000000e+16 : f32
    %10 = vector.broadcast %cst_10 : f32 to vector<16x16xf32>
    %11 = arith.select %2, %10, %9 : vector<16x16xi1>, vector<16x16xf32>
    %cst_11 = arith.constant dense<0xFF800000> : vector<16xf32>
    %12 = vector.multi_reduction <maximumf>, %11, %cst_11 [1] : vector<16x16xf32> to vector<16xf32>
    %13 = vector.shape_cast %12 : vector<16xf32> to vector<16x1xf32>
    %14 = vector.broadcast %13 : vector<16x1xf32> to vector<16x16xf32>
    %15 = arith.subf %11, %14 : vector<16x16xf32>
    %16 = math.exp %15 : vector<16x16xf32>
    %cst_12 = arith.constant dense<0.000000e+00> : vector<16xf32>
    %17 = vector.multi_reduction <add>, %16, %cst_12 [1] : vector<16x16xf32> to vector<16xf32>
    %18 = vector.shape_cast %17 : vector<16xf32> to vector<16x1xf32>
    %19 = tpu.reciprocal %18 {approx = true} : vector<16x1xf32> -> vector<16x1xf32>
    %20 = vector.broadcast %19 : vector<16x1xf32> to vector<16x16xf32>
    %21 = arith.mulf %16, %20 : vector<16x16xf32>
    %cst_13 = arith.constant dense<0.000000e+00> : vector<16x32xf32>
    %22 = tpu.matmul %21, %8, %cst_13 {dimension_numbers = #tpu.dot_dimension_numbers<[1], [0], [0], [1], [0, 0, 1, 1], [], []>} : vector<16x16xf32>, vector<16x32xf32>, vector<16x32xf32> -> vector<16x32xf32>
    %23 = vector.broadcast %5 : vector<1x32xf32> to vector<16x32xf32>
    %24 = arith.addf %22, %23 : vector<16x32xf32>
    %cst_14 = arith.constant 0.000000e+00 : f32
    %25 = vector.broadcast %cst_14 : f32 to vector<16x32xf32>
    %26 = arith.maximumf %24, %25 : vector<16x32xf32>
    %cst_15 = arith.constant dense<0.000000e+00> : vector<16x8xf32>
    %27 = tpu.matmul %26, %4, %cst_15 {dimension_numbers = #tpu.dot_dimension_numbers<[1], [0], [0], [1], [0, 0, 1, 1], [], []>} : vector<16x32xf32>, vector<32x8xf32>, vector<16x8xf32> -> vector<16x8xf32>
    %cst_16 = arith.constant dense<0.000000e+00> : vector<16x16xf32>
    %28 = tpu.matmul %27, %27, %cst_16 {dimension_numbers = #tpu.dot_dimension_numbers<[1], [1], [0], [0], [0, 0, 1, 0], [], []>} : vector<16x8xf32>, vector<16x8xf32>, vector<16x16xf32> -> vector<16x16xf32>
    %cst_17 = arith.constant -1.000000e+16 : f32
    %29 = vector.broadcast %cst_17 : f32 to vector<16x16xf32>
    %30 = arith.select %2, %29, %28 : vector<16x16xi1>, vector<16x16xf32>
    %cst_18 = arith.constant dense<0xFF800000> : vector<16xf32>
    %31 = vector.multi_reduction <maximumf>, %30, %cst_18 [1] : vector<16x16xf32> to vector<16xf32>
    %32 = vector.shape_cast %31 : vector<16xf32> to vector<16x1xf32>
    %33 = vector.broadcast %32 : vector<16x1xf32> to vector<16x16xf32>
    %34 = arith.subf %30, %33 : vector<16x16xf32>
    %35 = math.exp %34 : vector<16x16xf32>
    %cst_19 = arith.constant dense<0.000000e+00> : vector<16xf32>
    %36 = vector.multi_reduction <add>, %35, %cst_19 [1] : vector<16x16xf32> to vector<16xf32>
    %37 = vector.shape_cast %36 : vector<16xf32> to vector<16x1xf32>
    %38 = tpu.reciprocal %37 {approx = true} : vector<16x1xf32> -> vector<16x1xf32>
    %39 = vector.broadcast %38 : vector<16x1xf32> to vector<16x16xf32>
    %40 = arith.mulf %35, %39 : vector<16x16xf32>
    %cst_20 = arith.constant dense<0.000000e+00> : vector<16x8xf32>
    %41 = tpu.matmul %40, %27, %cst_20 {dimension_numbers = #tpu.dot_dimension_numbers<[1], [0], [0], [1], [0, 0, 1, 1], [], []>} : vector<16x16xf32>, vector<16x8xf32>, vector<16x8xf32> -> vector<16x8xf32>
    %42 = vector.broadcast %6 : vector<1x8xf32> to vector<16x8xf32>
    %43 = arith.addf %41, %42 : vector<16x8xf32>
    %c0_21 = arith.constant 0 : index
    %c0_22 = arith.constant 0 : index
    %44 = vector.load %arg3[%c0_21, %c0_22] : memref<16x8xf32, #tpu.memory_space<vmem>>, vector<16x8xf32>
    tpu.vector_store %arg3[%c0_21, %c0_22], %43 {strides = array<i32>} : memref<16x8xf32, #tpu.memory_space<vmem>>, vector<16x8xf32>,
    return
  }
}

</mosaic_0001>

<bundles_post_ra>
// kernel: tpu_custom_call.1
= control target key start
LH: loop header
LB: loop body
LE: loop exit
PB: predicated region body
PF: predicated region fallthrough
CT: control target
= control target key end

     0   :  { %vm28_vm0 = vcmask 130048   ;;  %vm110_vm1 = vcmask 261120   ;;  %vm384_vm5 = vcmask 64512   ;;  %s821_s2 = inlined_call_operand.vmem [shape: f32[64,32], index: 2, kind: input, shape index: {}]   ;;  %s822_s0 = inlined_call_operand.vmem [shape: f32[16,16], index: 0, kind: input, shape index: {}]   ;;  %s823_s1 = inlined_call_operand.vmem [shape: f32[16,16], index: 1, kind: input, shape index: {}]   ;;  %s824_s3 = inlined_call_operand.vmem [shape: f32[16,8], index: 3, kind: output, shape index: {}]  }
   0x1   :  { %v18_v0 = vld [vmem:[%s821_s2] sm:$0xff]  ;;  %v19_v1 = vld [vmem:[%s821_s2 + $0x8] sm:$0xff]  ;;  %vm676_vm2 = vmpackc.low %vm110_vm1, %vm110_vm1 }
   0x2   :  { %v26_v2 = vld [vmem:[%s822_s0] sm:$0xff]  ;;  %v671_v3 = vpack.c.bf16 %v19_v1, %v18_v0  ;;  %v27_v4 = vld [vmem:[%s822_s0 + $0x8] sm:$0xff]  ;;  %v20_v26 = vld [vmem:[%s821_s2 + $0x10] sm:$0xff] }
   0x3   :  { %629 = vmatprep.mubr.msk.f32.mxu0 %vm28_vm0, %v26_v2  ;;  %v760_v8 = vld [vmem:[%s823_s1] sm:$0xff]  ;;  %v765_v9 = vld [vmem:[%s823_s1 + $0x8] sm:$0xff]  ;;  %v21_v27 = vld [vmem:[%s821_s2 + $0x18] sm:$0xff] }
   0x4   :  { %672 = vmatprep.subr.bf16.mxu0 %v671_v3  ;;  %vm16_vm3 = vcmp.eq.f32.partialorder %v760_v8, 0.0  ;;  %vm17_vm4 = vcmp.eq.f32.partialorder %v765_v9, 0.0  ;;  %v685_v28 = vpack.c.bf16 %v21_v27, %v20_v26  ;;  %v22_v35 = vld [vmem:[%s821_s2 + $0x20] sm:$0xff]  ;;  %v23_v36 = vld [vmem:[%s821_s2 + $0x28] sm:$0xff]  ;;  %v587_v38 = vld [vmem:[%s821_s2 + $0x30] ss:$0 sm:$0xff] }
   0x5   :  { %674 = vmatpush3.bf16.msra.mxu0 %v671_v3  ;;  %v689_v37 = vpack.c.bf16 %v23_v36, %v22_v35  ;;  %vm694_vm6 = vmpackc.low %vm384_vm5, %vm384_vm5 }
   0x8   :  { %630 = vmatmul.mubr.msk.f32.vlgmr.msra.gmra.mrb[0].mxu0 %vm28_vm0, %v27_v4 }
  0xdb   :  { %v631_v5 = vpop.f32.mrb[0].mxu0 }
  0xdc   :  { %v101_v6 = vpop.f32.mrb[1].mxu0 }
  0xdd   :  { %v675_v7 = vpack.c.bf16 %v631_v5, %v101_v6  ;;  %636 = vmatprep.mubr.msk.f32.mxu1 %vm110_vm1, %v101_v6  ;;  %v596_v6 = vld [vmem:[%s821_s2 + $0x38] ss:$0 sm:$0xff] }
  0xdf   :  { %677 = vmatprep.subr.msk.bf16.mxu1 %vm676_vm2, %v675_v7  ;;  %682 = vmatprep.subr.bf16.mxu0 %v675_v7 }
  0xe0   :  { %680 = vmatpush3.bf16.xpose.msk.msra.mxu1 %vm676_vm2, %v675_v7  ;;  %684 = vmatpush3.bf16.msra.mxu0 %v675_v7 }
  0xe1   :  { %686 = vmatprep.subr.bf16.mxu0 %v685_v28 }
  0xe7   :  { %637 = vmatmul.mubr.msk.f32.vlgmr.msra.gmra.mrb[0].mxu1 %vm110_vm1, %v631_v5 }
 0x1ba   :  { %v638_v10 = vpop.f32.mrb[0].mxu1 }
 0x1bb   :  { %v183_v11 = vpop.f32.mrb[1].mxu1  ;;  %v193_v14 = vsel %vm17_vm4, -1e+16, %v638_v10 }
 0x1bc   :  { %v192_v12 = vsel %vm16_vm3, -1e+16, %v183_v11  ;;  %v197_v15 = vsel %vm28_vm0, %v193_v14, -inf }
 0x1bd   :  { %v194_v13 = vsel %vm28_vm0, %v192_v12, -inf }
 0x1be   :  { %195 = vmax.xlane.f32.xlu0 %v194_v13 }
 0x1c2   :  { %198 = vmax.xlane.f32.xlu0 %v197_v15 }
 0x24b   :  { %v196_v16 = vpop.xlane.xlu0 %195 }
 0x24c   :  { %v200_v17 = vsub.f32 %v192_v12, %v196_v16 }
 0x24e   :  { %v202_v18 = vmul.f32 1.442695, %v200_v17 }
 0x24f   :  { %v199_v19 = vpop.xlane.xlu0 %198 }
 0x250   :  { %703 = vpow2.f32 %v202_v18  ;;  %v201_v20 = vsub.f32 %v193_v14, %v199_v19 }
 0x252   :  { %v204_v21 = vmul.f32 1.442695, %v201_v20 }
 0x254   :  { %705 = vpow2.f32 %v204_v21 }
 0x25a   :  { %v704_v22 = vpop.eup %703 }
 0x25b   :  { %v206_v23 = vsel %vm28_vm0, %v704_v22, 0.0 }
 0x25c   :  { %207 = vadd.xlane.f32.xlu1 %v206_v23 }
 0x25e   :  { %v706_v24 = vpop.eup %705 }
 0x25f   :  { %v209_v25 = vsel %vm28_vm0, %v706_v24, 0.0 }
 0x260   :  { %210 = vadd.xlane.f32.xlu1 %v209_v25 }
 0x2e9   :  { %v208_v29 = vpop.xlane.xlu1 %207 }
 0x2ea   :  { %707 = vrcp.f32 %v208_v29 }
 0x2ed   :  { %v211_v30 = vpop.xlane.xlu1 %210 }
 0x2ee   :  { %709 = vrcp.f32 %v211_v30 }
 0x2f4   :  { %v708_v31 = vpop.eup %707 }
 0x2f5   :  { %v214_v32 = vmul.f32 %v708_v31, %v704_v22 }
 0x2f7   :  { %643 = vmatprep.mubr.msk.f32.mxu0 %vm28_vm0, %v214_v32 }
 0x2f8   :  { %v710_v33 = vpop.eup %709 }
 0x2f9   :  { %v215_v34 = vmul.f32 %v710_v33, %v706_v24 }
 0x2fb   :  { %644 = vmatmul.mubr.msk.f32.vlgmr.msra.gmra.mrb[2].mxu0 %vm28_vm0, %v215_v34 }
 0x2fc   :  { %688 = vmatpush3.bf16.msra.mxu0 %v685_v28 }
 0x2fd   :  { %690 = vmatprep.subr.bf16.mxu0 %v689_v37 }
 0x300   :  { %692 = vmatpush3.bf16.msra.mxu0 %v689_v37 }
 0x3ce   :  { %v645_v39 = vpop.f32.mrb[2].mxu0 }
 0x3cf   :  { %v298_v40 = vadd.f32 %v645_v39, %v587_v38  ;;  %v292_v41 = vpop.f32.mrb[3].mxu0 }
 0x3d0   :  { %v293_v42 = vadd.f32 %v587_v38, %v292_v41 }
 0x3d1   :  { %v302_v44 = vmax.f32 %v298_v40, 0.0 }
 0x3d2   :  { %v301_v43 = vmax.f32 %v293_v42, 0.0 }
 0x3d4   :  { %654 = vmatprep.mubr.msk.f32.mxu0 %vm110_vm1, %v301_v43 }
 0x3d5   :  { %655 = vmatmul.mubr.msk.f32.vlgmr.msra.gmra.mrb[4].mxu0 %vm110_vm1, %v302_v44 }
 0x4a8   :  { %v656_v45 = vpop.f32.mrb[4].mxu0 }
 0x4a9   :  { %v375_v46 = vpop.f32.mrb[5].mxu0 }
 0x4aa   :  { %v693_v47 = vpack.c.bf16 %v656_v45, %v375_v46  ;;  %661 = vmatprep.mubr.msk.f32.mxu1 %vm384_vm5, %v375_v46 }
 0x4ac   :  { %695 = vmatprep.subr.msk.bf16.mxu1 %vm694_vm6, %v693_v47  ;;  %700 = vmatprep.subr.bf16.mxu0 %v693_v47 }
 0x4ad   :  { %698 = vmatpush3.bf16.xpose.msk.msra.mxu1 %vm694_vm6, %v693_v47  ;;  %702 = vmatpush3.bf16.msra.mxu0 %v693_v47 }
 0x4b4   :  { %662 = vmatmul.mubr.msk.f32.vlgmr.msra.gmra.mrb[2].mxu1 %vm384_vm5, %v656_v45 }
 0x587   :  { %v663_v48 = vpop.f32.mrb[2].mxu1 }
 0x588   :  { %v467_v49 = vsel %vm17_vm4, -1e+16, %v663_v48  ;;  %v457_v50 = vpop.f32.mrb[3].mxu1 }
 0x589   :  { %v466_v51 = vsel %vm16_vm3, -1e+16, %v457_v50  ;;  %v471_v52 = vsel %vm28_vm0, %v467_v49, -inf }
 0x58a   :  { %472 = vmax.xlane.f32.xlu1 %v471_v52  ;;  %v468_v53 = vsel %vm28_vm0, %v466_v51, -inf }
 0x58b   :  { %469 = vmax.xlane.f32.xlu0 %v468_v53 }
 0x617   :  { %v473_v54 = vpop.xlane.xlu1 %472 }
 0x618   :  { %v475_v55 = vsub.f32 %v467_v49, %v473_v54  ;;  %v470_v56 = vpop.xlane.xlu0 %469 }
 0x619   :  { %v474_v57 = vsub.f32 %v466_v51, %v470_v56 }
 0x61a   :  { %v478_v58 = vmul.f32 1.442695, %v475_v55 }
 0x61b   :  { %v476_v59 = vmul.f32 1.442695, %v474_v57 }
 0x61c   :  { %711 = vpow2.f32 %v478_v58 }
 0x61d   :  { %713 = vpow2.f32 %v476_v59 }
 0x626   :  { %v712_v60 = vpop.eup %711 }
 0x627   :  { %v714_v61 = vpop.eup %713  ;;  %v483_v62 = vsel %vm28_vm0, %v712_v60, 0.0 }
 0x628   :  { %484 = vadd.xlane.f32.xlu1 %v483_v62  ;;  %v480_v63 = vsel %vm28_vm0, %v714_v61, 0.0 }
 0x629   :  { %481 = vadd.xlane.f32.xlu0 %v480_v63 }
 0x6b5   :  { %v485_v0 = vpop.xlane.xlu1 %484 }
 0x6b6   :  { %715 = vrcp.f32 %v485_v0  ;;  %v482_v1 = vpop.xlane.xlu0 %481 }
 0x6b7   :  { %717 = vrcp.f32 %v482_v1 }
 0x6c0   :  { %v716_v2 = vpop.eup %715 }
 0x6c1   :  { %v718_v3 = vpop.eup %717  ;;  %v489_v5 = vmul.f32 %v716_v2, %v712_v60 }
 0x6c2   :  { %v488_v4 = vmul.f32 %v718_v3, %v714_v61 }
 0x6c4   :  { %668 = vmatprep.mubr.msk.f32.mxu0 %vm28_vm0, %v488_v4 }
 0x6c5   :  { %669 = vmatmul.mubr.msk.f32.vlgmr.msra.gmra.mrb[6].mxu0 %vm28_vm0, %v489_v5 }
 0x798   :  { %v670_v7 = vpop.f32.mrb[6].mxu0 }
 0x799   :  { %v572_v8 = vadd.f32 %v670_v7, %v596_v6  ;;  %v566_v9 = vpop.f32.mrb[7].mxu0 }
 0x79a   :  { %v567_v10 = vadd.f32 %v596_v6, %v566_v9 }
 0x79b   :  { %576 = vst.msk [vmem:[%s824_s3 + $0x8] sm:$0xff] %vm384_vm5, %v572_v8 }
 0x79c   :  { %575 = vst.msk [vmem:[%s824_s3] sm:$0xff] %vm384_vm5, %v567_v10 }

</bundles_post_ra>
